<compile_context>
chip_gen: v7x
topology: tpu7x:2x2x1
jax: 0.10.0
libtpu: 0.0.40
codegen_flags: <defaults>
</compile_context>

<pallas_src>
import jax
import jax.numpy as jnp
from jax import lax
from jax.experimental import pallas as pl
from jax.experimental.pallas import tpu as pltpu

EPS = 1e-5  # PyTorch nn.LayerNorm default


# ---------------------------------------------------------------------------
# Kernels
# ---------------------------------------------------------------------------
def _ln_transpose_kernel(x_ref, g_ref, b_ref, o_ref):
    """Fused LayerNorm(C) + NCHW->(B,L,C) layout change for one spatial tile.

    x_ref: (1, C, T) block of the (B, C, H*W) input  (C on sublanes, T lane-dense)
    g_ref, b_ref: (C, 1) LayerNorm affine params (broadcast along lanes)
    o_ref: (1, T, C) block of the (B, H*W, C) output
    """
    x = x_ref[0].astype(jnp.float32)                      # (C, T)
    mean = jnp.mean(x, axis=0, keepdims=True)             # (1, T) sublane reduce (XLU)
    xc = x - mean
    var = jnp.mean(xc * xc, axis=0, keepdims=True)        # biased var (PyTorch LN)
    inv = lax.rsqrt(var + EPS)                            # EUP slot
    gamma = g_ref[...].astype(jnp.float32)                # (C, 1)
    beta = b_ref[...].astype(jnp.float32)                 # (C, 1)
    y = xc * inv * gamma + beta                           # (C, T)
    # In-register transpose (XLU) fuses the layout change into the same HBM pass.
    o_ref[0] = jnp.transpose(y.astype(o_ref.dtype), (1, 0))   # (T, C)


def _transpose_kernel(x_ref, o_ref):
    """norm_layer=None path: pure flatten(2).transpose(1,2)."""
    o_ref[0] = jnp.transpose(x_ref[0], (1, 0)).astype(o_ref.dtype)


# ---------------------------------------------------------------------------
# Tile sizing
# ---------------------------------------------------------------------------
def _choose_tile_hw(L, C, in_itemsize, out_itemsize, io_budget_bytes):
    """Pick the largest lane-dense spatial tile (multiple of 128, or all of L)
    whose double-buffered in/out VMEM tiles (incl. lane/sublane padding) fit
    the budget.  Budget is conservative so default scoped VMEM works on
    v5e (16 MiB) / v6e (32 MiB) / v7x (32 of 64 MiB physical)."""
    c_sub = -(-C // 8) * 8        # input tile:  C on sublanes (padded to 8)
    c_lane = -(-C // 128) * 128   # output tile: C on lanes    (padded to 128)
    bytes_per_col = 2 * (c_sub * in_itemsize + c_lane * out_itemsize)  # x2 buffers
    max_cols = max(128, (io_budget_bytes // bytes_per_col) // 128 * 128)
    # Also bound the in-kernel f32 working tile (compiler temporaries live in VMEM).
    f32_cap = max(128, ((768 * 1024) // (c_sub * 4)) // 128 * 128)
    max_cols = min(max_cols, f32_cap)
    if L <= max_cols:
        return L                       # one tile per image; full-dim block, any L
    return min(max_cols, max(128, (L // 128) * 128))


# ---------------------------------------------------------------------------
# Wrapper
# ---------------------------------------------------------------------------
def patch_embed_forward(x_nchw, gamma=None, beta=None, *,
                        vmem_io_budget_bytes=6 * 1024 * 1024):
    """PatchEmbed forward.

    Args:
      x_nchw: (B, C, H, W) input, C == embed_dim.
      gamma, beta: optional (C,) LayerNorm affine params (norm_layer=nn.LayerNorm).
                   If gamma is None the norm is skipped (norm_layer=None).
    Returns:
      (B, H*W, C) array, same dtype as input.
    """
    B, C, H, W = x_nchw.shape
    L = H * W
    x_bcl = x_nchw.reshape(B, C, L)        # free reshape, no data movement
    out_dtype = x_nchw.dtype

    in_isz = jnp.dtype(x_nchw.dtype).itemsize
    out_isz = jnp.dtype(out_dtype).itemsize
    tile_hw = _choose_tile_hw(L, C, in_isz, out_isz, vmem_io_budget_bytes)
    num_tiles = pl.cdiv(L, tile_hw)

    compiler_params = pltpu.CompilerParams(
        dimension_semantics=("parallel", "parallel"),
        vmem_limit_bytes=32 * 1024 * 1024,
    )

    x_spec = pl.BlockSpec((1, C, tile_hw), lambda bi, li: (bi, 0, li))
    o_spec = pl.BlockSpec((1, tile_hw, C), lambda bi, li: (bi, li, 0))

    if gamma is not None:
        g2 = gamma.reshape(C, 1)
        b2 = beta.reshape(C, 1)
        # Constant (0, 0) index maps -> gamma/beta are DMA'd once, not per step.
        p_spec = pl.BlockSpec((C, 1), lambda bi, li: (0, 0))
        out = pl.pallas_call(
            _ln_transpose_kernel,
            out_shape=jax.ShapeDtypeStruct((B, L, C), out_dtype),
            grid_spec=pl.GridSpec(
                grid=(B, num_tiles),
                in_specs=[x_spec, p_spec, p_spec],
                out_specs=o_spec,
            ),
            compiler_params=compiler_params,
        )(x_bcl, g2, b2)
    else:
        out = pl.pallas_call(
            _transpose_kernel,
            out_shape=jax.ShapeDtypeStruct((B, L, C), out_dtype),
            grid_spec=pl.GridSpec(
                grid=(B, num_tiles),
                in_specs=[x_spec],
                out_specs=o_spec,
            ),
            compiler_params=compiler_params,
        )(x_bcl)
    return out


# ---------------------------------------------------------------------------
# Reference + test
# ---------------------------------------------------------------------------
def _reference(x_nchw, gamma=None, beta=None):
    B, C, H, W = x_nchw.shape
    x = jnp.transpose(x_nchw.reshape(B, C, H * W), (0, 2, 1))
    if gamma is None:
        return x
    x32 = x.astype(jnp.float32)
    mean = jnp.mean(x32, axis=-1, keepdims=True)
    var = jnp.mean((x32 - mean) ** 2, axis=-1, keepdims=True)
    y = (x32 - mean) * lax.rsqrt(var + EPS) * gamma + beta
    return y.astype(x.dtype)


if __name__ == "__main__":
    key = jax.random.PRNGKey(0)
    kx, kg, kb, kx2 = jax.random.split(key, 4)

    # Config 1: LayerNorm path (embed_dim=32, 16x16 spatial).
    B, C, H, W = 2, 32, 16, 16
    x = jax.random.normal(kx, (B, C, H, W), dtype=jnp.float32)
    gamma = 1.0 + 0.1 * jax.random.normal(kg, (C,), dtype=jnp.float32)
    beta = 0.1 * jax.random.normal(kb, (C,), dtype=jnp.float32)

    out = jax.block_until_ready(patch_embed_forward(x, gamma, beta))
    ref = _reference(x, gamma, beta)
    assert out.shape == (B, H * W, C)
    assert jnp.allclose(out, ref, atol=1e-5, rtol=1e-5), \
        float(jnp.max(jnp.abs(out - ref)))

    # Config 2: norm_layer=None path (pure flatten+transpose), different shape.
    B2, C2, H2, W2 = 1, 64, 8, 8
    x2 = jax.random.normal(kx2, (B2, C2, H2, W2), dtype=jnp.float32)
    out2 = jax.block_until_ready(patch_embed_forward(x2))
    ref2 = _reference(x2)
    assert out2.shape == (B2, H2 * W2, C2)
    assert jnp.array_equal(out2, ref2)

    print("KERNEL_OK")
</pallas_src>

<mosaic_0001>
module attributes {stable_mosaic.version = 11 : i64} {
  func.func @_ln_transpose_kernel(%arg0: i32, %arg1: i32, %arg2: memref<1x32x256xf32, #tpu.memory_space<vmem>>, %arg3: memref<32x1xf32, #tpu.memory_space<vmem>>, %arg4: memref<32x1xf32, #tpu.memory_space<vmem>>, %arg5: memref<1x256x32xf32, #tpu.memory_space<vmem>>) attributes {dimension_semantics = [#tpu.dimension_semantics<parallel>, #tpu.dimension_semantics<parallel>], iteration_bounds = array<i64: 2, 1>, scalar_prefetch = 0 : i64, scratch_operands = 0 : i64, tpu.core_type = #tpu.core_type<tc>, window_params = [{transform_indices = @transform_0, window_bounds = array<i64: 1, 32, 256>}, {pipeline_mode = #tpu.pipeline_mode<synchronous>, transform_indices = @transform_1, window_bounds = array<i64: 32, 1>}, {pipeline_mode = #tpu.pipeline_mode<synchronous>, transform_indices = @transform_2, window_bounds = array<i64: 32, 1>}, {transform_indices = @transform_3, window_bounds = array<i64: 1, 256, 32>}]} {
    %c0 = arith.constant 0 : index
    %c0_0 = arith.constant 0 : index
    %c0_1 = arith.constant 0 : index
    %0 = vector.load %arg2[%c0, %c0_0, %c0_1] : memref<1x32x256xf32, #tpu.memory_space<vmem>>, vector<1x32x256xf32>
    %1 = vector.shape_cast %0 : vector<1x32x256xf32> to vector<32x256xf32>
    %cst = arith.constant dense<0.000000e+00> : vector<256xf32>
    %2 = vector.multi_reduction <add>, %1, %cst [0] : vector<32x256xf32> to vector<256xf32>
    %3 = vector.shape_cast %2 : vector<256xf32> to vector<1x256xf32>
    %cst_2 = arith.constant 3.200000e+01 : f32
    %4 = vector.broadcast %cst_2 : f32 to vector<1x256xf32>
    %5 = arith.divf %3, %4 : vector<1x256xf32>
    %6 = vector.broadcast %5 : vector<1x256xf32> to vector<32x256xf32>
    %7 = arith.subf %1, %6 : vector<32x256xf32>
    %8 = arith.mulf %7, %7 : vector<32x256xf32>
    %cst_3 = arith.constant dense<0.000000e+00> : vector<256xf32>
    %9 = vector.multi_reduction <add>, %8, %cst_3 [0] : vector<32x256xf32> to vector<256xf32>
    %10 = vector.shape_cast %9 : vector<256xf32> to vector<1x256xf32>
    %cst_4 = arith.constant 3.200000e+01 : f32
    %11 = vector.broadcast %cst_4 : f32 to vector<1x256xf32>
    %12 = arith.divf %10, %11 : vector<1x256xf32>
    %cst_5 = arith.constant 9.99999974E-6 : f32
    %13 = vector.broadcast %cst_5 : f32 to vector<1x256xf32>
    %14 = arith.addf %12, %13 : vector<1x256xf32>
    %15 = math.rsqrt %14 : vector<1x256xf32>
    %c0_6 = arith.constant 0 : index
    %c0_7 = arith.constant 0 : index
    %16 = vector.load %arg3[%c0_6, %c0_7] : memref<32x1xf32, #tpu.memory_space<vmem>>, vector<32x1xf32>
    %c0_8 = arith.constant 0 : index
    %c0_9 = arith.constant 0 : index
    %17 = vector.load %arg4[%c0_8, %c0_9] : memref<32x1xf32, #tpu.memory_space<vmem>>, vector<32x1xf32>
    %18 = vector.broadcast %15 : vector<1x256xf32> to vector<32x256xf32>
    %19 = arith.mulf %7, %18 : vector<32x256xf32>
    %20 = vector.broadcast %16 : vector<32x1xf32> to vector<32x256xf32>
    %21 = arith.mulf %19, %20 : vector<32x256xf32>
    %22 = vector.broadcast %17 : vector<32x1xf32> to vector<32x256xf32>
    %23 = arith.addf %21, %22 : vector<32x256xf32>
    %24 = tpu.transpose %23, [1, 0] : vector<32x256xf32> -> vector<256x32xf32>
    %c0_10 = arith.constant 0 : index
    %c0_11 = arith.constant 0 : index
    %c0_12 = arith.constant 0 : index
    %25 = vector.load %arg5[%c0_10, %c0_11, %c0_12] : memref<1x256x32xf32, #tpu.memory_space<vmem>>, vector<1x256x32xf32>
    %26 = vector.shape_cast %25 : vector<1x256x32xf32> to vector<256x32xf32>
    %27 = vector.shape_cast %24 : vector<256x32xf32> to vector<1x256x32xf32>
    tpu.vector_store %arg5[%c0_10, %c0_11, %c0_12], %27 {strides = array<i32>} : memref<1x256x32xf32, #tpu.memory_space<vmem>>, vector<1x256x32xf32>,
    return
  }
  func.func @transform_0(%arg0: i32, %arg1: i32) -> (i32, i32, i32) {
    %c0_i32 = arith.constant 0 : i32
    %c0_i32_0 = arith.constant 0 : i32
    return %arg0, %c0_i32, %arg1 : i32, i32, i32
  }
  func.func @transform_1(%arg0: i32, %arg1: i32) -> (i32, i32) {
    %c0_i32 = arith.constant 0 : i32
    %c0_i32_0 = arith.constant 0 : i32
    %c0_i32_1 = arith.constant 0 : i32
    return %c0_i32, %c0_i32_0 : i32, i32
  }
  func.func @transform_2(%arg0: i32, %arg1: i32) -> (i32, i32) {
    %c0_i32 = arith.constant 0 : i32
    %c0_i32_0 = arith.constant 0 : i32
    %c0_i32_1 = arith.constant 0 : i32
    return %c0_i32, %c0_i32_0 : i32, i32
  }
  func.func @transform_3(%arg0: i32, %arg1: i32) -> (i32, i32, i32) {
    %c0_i32 = arith.constant 0 : i32
    %c0_i32_0 = arith.constant 0 : i32
    return %arg0, %arg1, %c0_i32 : i32, i32, i32
  }
}

</mosaic_0001>

<bundles_post_ra>
// kernel: tpu_custom_call.1
= control target key start
LH: loop header
LB: loop body
LE: loop exit
PB: predicated region body
PF: predicated region fallthrough
CT: control target
= control target key end

     0   :  { %8 = vsyncpa [#allocation3], 0  ;;  %s962_s0 = inlined_call_operand.hbm [shape: f32[2,32,256], index: 0, kind: input, shape index: {}]   ;;  %s963_s1 = inlined_call_operand.vmem [shape: f32[32,1], index: 1, kind: input, shape index: {}]   ;;  %s964_s2 = inlined_call_operand.vmem [shape: f32[32,1], index: 2, kind: input, shape index: {}]   ;;  %s965_s3 = inlined_call_operand.vmem [shape: f32[2,256,32], index: 3, kind: output, shape index: {}]  }
   0x1   :  { %10 = vsyncpa [#allocation3 + $0x1], 0  ;;  %s738_s12 = smov 0   ;;  %s740_s13 = smov 0  }
   0x2   :  { %s742_s14 = smov 0   ;;  %s744_s15 = smov 0  }
   0x3   :  { %s746_s16 = smov 0   ;;  %s748_s17 = smov 0  }
   0x4 LB: > { %s552_s18 = sadd.s32 4294967295, %s712_s17   ;;  %s28_s19 = sadd.s32 1, %s708_s16  ;;  %s712_s17 = sphi %s748_s17, %s16_s17   ;;  %s708_s16 = sphi %s746_s16, %s973_s16   ;;  %s704_s15 = sphi %s744_s15, %s972_s15   ;;  %s700_s14 = sphi %s742_s14, %s971_s14   ;;  %s696_s13 = sphi %s740_s13, %s970_s13   ;;  %s692_s12 = sphi %s738_s12, %s969_s12  }
   0x5   : > { %p30_p0 = scmp.ge.s32.totalorder %s28_s19, 2  ;;  %s37_s20 = sadd.s32 1, %s700_s14 }
   0x6   : > { %p44_p1 = scmp.ne.s32.totalorder %s700_s14, %s696_s13  ;;  %p45_p2 = scmp.eq.s32.totalorder %s712_s17, 0 }
   0x7   : > { %s975_s19 = smov (%p30_p0, %s28_s19), 0  ;;  %p50_p4 = scmp.ne.s32.totalorder %s696_s13, %s692_s12 }
   0x8   : > { %p774_p3 = por %p45_p2, %p44_p1  ;;  %s32_s22 = ssub.s32 %s708_s16, %s975_s19 }
   0x9   : > { %p51_p5 = scmp.eq.s32.totalorder %s552_s18, 0  ;;  %p35_p6 = scmp.eq.s32.totalorder %s32_s22, 0 }
   0xa   : > { %p573_p8 = scmp.lt.s32.totalorder %s712_s17, 2  ;;  %s150_s25 = sand.u32 1, %s700_s14  }
   0xb   : > { %p781_p7 = por %p51_p5, %p50_p4  ;;  %s565_s26 = sshll.u32 %s708_s16, 10 }
   0xc   : > { %s787_s24 = scalar_select %p35_p6, %s700_s14, %s37_s20  }
   0xd   : > { %s556_s27 = sshll.u32 %s150_s25, 6  ;;  %s794_s30 = scalar_lea.hbm %s962_s0, %s565_s26 }
   0xe   : > { %s154_s4 = scalar_lea.vmem [#allocation2], %s556_s27  ;;  %p798_p9 = pnand %p573_p8, %p774_p3 }
   0xf   : > { %s163_s5 = sshll.u32 %s154_s4, 4  ;;  %s804_s7 = scalar_lea.sflag [#allocation3], %s150_s25  ;;  %s802_s5 = int_to_ptr.vmem [resolvable:$true] %s163_s5 }
  0x10   : > { %s632_s8 = scalar_lea.hbm %s794_s30, 1024  ;;  %p634_p11 = pneg %p798_p9 }
  0x11   : > { %p633_p10 = scmp.ne.s32.totalorder %s794_s30, %s632_s8  ;;  %s637_s11 = scalar_lea.hbm %s962_s0, 2048 }
  0x12   : > { %p638_p0 = scmp.lt.u32.totalorder %s794_s30, %s962_s0  ;;  %p639_p1 = scmp.lt.u32.totalorder %s637_s11, %s632_s8 }
  0x13   : > { %p635_p12 = pnand %p634_p11, %p633_p10  ;;  %p641_p3 = scmp.lt.u32.totalorder %s632_s8, %s794_s30 }
  0x14   : > { %p640_p2 = por %p639_p1, %p638_p0 }
  0x15   : > { %p636_p13 = pneg %p635_p12 }
  0x16   : > { %p642_p4 = por %p641_p3, %p640_p2 }
  0x18   : > { %p643_p5 = pnand %p642_p4, %p636_p13 }
  0x1a   : > { %646 = shalt.err (!%p643_p5)
}
  0x1b   : > { %s647_s20 = scalar_lea.vmem %s802_s5, 1024  ;;  %s714_s21 = smov [#allocation2]  }
  0x1c   : > { %p648_p6 = scmp.ne.s32.totalorder %s802_s5, %s647_s20  ;;  %s652_s22 = sshll.u32 %s714_s21, 4  ;;  %s653_s22 = int_to_ptr.vmem [resolvable:$false] %s652_s22 }
  0x1d   : > { %s654_s25 = scalar_lea.vmem %s653_s22, 2048  ;;  %p655_p12 = scmp.lt.s32.totalorder %s802_s5, %s653_s22 }
  0x1e   : > { %p650_p8 = pnand %p648_p6, %p634_p11  ;;  %p656_p0 = scmp.lt.s32.totalorder %s654_s25, %s647_s20 }
  0x20   : > { %p651_p10 = pneg %p650_p8  ;;  %p657_p1 = por %p656_p0, %p655_p12 }
  0x22   : > { %p658_p2 = pnand %p657_p1, %p651_p10 }
  0x24   : > { %661 = shalt.err (!%p658_p2)
}
  0x25   : > { %s715_s26 = smov 256   ;;  %s716_s27 = smov 16  }
  0x26   : > { %572 = dma.hbm_to_vmem [thread:$0]  (!%p798_p9), %s794_s30, 1024, %s802_s5, %s804_s7, %s715_s26, %s715_s26, %s716_s27  }
  0x27   : > { %p559_p11 = scmp.ge.s32.totalorder %s712_s17, 1  ;;  %p171_p13 = scmp.lt.s32.totalorder %s712_s17, 3 }
  0x29   : > { %p172_p3 = pnand %p559_p11, %p171_p13 }
  0x2a   : > { %s177_s28 = sand.u32 (!%p172_p3), 1, %s696_s13  }
  0x2b   : > { %175 = sbr.rel (%p172_p3) target bundleno = 377 (0x179), region = 32  ;;  %s560_s29 = sshll.u32 (!%p172_p3), %s177_s28, 6 }
  0x2c   : > { %s178_s4 = scalar_lea.sflag (!%p172_p3), [#allocation3], %s177_s28  ;;  %s835_s8 = scalar_lea.vmem (!%p172_p3), [#allocation2], %s560_s29 }
  0x32   : > { %687 = dma.done.wait (%p781_p7), %s178_s4, 1024  }
  0x33   : > { %689 = vsyncadd (%p781_p7), %s178_s4, 4294966272  ;;  %v717_v0 = vmov 0   ;;  %v292_v1 = vld [vmem:[%s964_s2] sm:$0xff]  ;;  %v290_v3 = vld [vmem:[%s963_s1 + $0x10] sm:$0xff]  ;;  %p210_p7 = scmp.lt.s32.totalorder %s704_s15, 1  ;;  %vm424_vm0 = vcmask 261120  }
  0x34   : > { %627 = vset.pattern.permute.xlu1 %v717_v0  ;;  %626 = vset.pattern.permute.xlu0 %v717_v0  ;;  %v288_v2 = vld [vmem:[%s963_s1] sm:$0xff]  ;;  %v289_v4 = vld [vmem:[%s963_s1 + $0x8] sm:$0xff]  ;;  %v291_v5 = vld [vmem:[%s963_s1 + $0x18] sm:$0xff] }
  0x35   : > { %334 = vperm.xlu1 %627, %v292_v1   ;;  %306 = vperm.xlu0 %626, %v288_v2   ;;  %v293_v6 = vld [vmem:[%s964_s2 + $0x8] sm:$0xff]  ;;  %v295_v7 = vld [vmem:[%s964_s2 + $0x18] sm:$0xff]  ;;  %v294_v8 = vld [vmem:[%s964_s2 + $0x10] sm:$0xff]  ;;  %s977_s15 = smov (!%p210_p7, %s704_s15), 1 }
  0x36   : > { %v219_v9 = vld [vmem:[%s835_s8] sm:$0xff]  ;;  %v221_v10 = vld [vmem:[%s835_s8 + $0x10] sm:$0xff]  ;;  %v220_v11 = vld [vmem:[%s835_s8 + $0x8] sm:$0xff]  ;;  %s566_s28 = sshll.u32 %s977_s15, 8 }
  0x37   : > { %v222_v12 = vld [vmem:[%s835_s8 + $0x18] sm:$0xff]  ;;  %v227_v13 = vadd.f32 %v221_v10, %v219_v9  ;;  %v223_v14 = vld [vmem:[%s835_s8 + $0x20] sm:$0xff]  ;;  %v224_v16 = vld [vmem:[%s835_s8 + $0x28] sm:$0xff] }
  0x38   : > { %v236_v15 = vadd.f32 %v222_v12, %v220_v11  ;;  %v225_v18 = vld [vmem:[%s835_s8 + $0x30] sm:$0xff]  ;;  %v226_v20 = vld [vmem:[%s835_s8 + $0x38] sm:$0xff]  ;;  %s878_s8 = scalar_lea.vmem %s965_s3, %s566_s28 }
  0x39   : > { %316 = vperm.xlu1 %627, %v290_v3   ;;  %311 = vperm.xlu0 %626, %v289_v4   ;;  %v228_v17 = vadd.f32 %v227_v13, %v223_v14 }
  0x3a   : > { %v237_v19 = vadd.f32 %v236_v15, %v224_v16 }
  0x3b   : > { %v229_v21 = vadd.f32 %v228_v17, %v225_v18 }
  0x3c   : > { %v238_v22 = vadd.f32 %v237_v19, %v226_v20 }
  0x3d   : > { %321 = vperm.xlu1 %627, %v291_v5   ;;  %339 = vperm.xlu0 %626, %v293_v6   ;;  %v230_v23 = vrot.slane %v229_v21, 4 }
  0x3e   : > { %v239_v24 = vrot.slane %v238_v22, 4 }
  0x3f   : > { %v231_v25 = vadd.f32 %v230_v23, %v229_v21 }
  0x40   : > { %v240_v26 = vadd.f32 %v239_v24, %v238_v22 }
  0x41   : > { %349 = vperm.xlu1 %627, %v295_v7   ;;  %344 = vperm.xlu0 %626, %v294_v8   ;;  %v232_v27 = vrot.slane %v231_v25, 2 }
  0x42   : > { %v241_v28 = vrot.slane %v240_v26, 2 }
  0x43   : > { %v233_v29 = vadd.f32 %v232_v27, %v231_v25 }
  0x44   : > { %v242_v30 = vadd.f32 %v241_v28, %v240_v26 }
  0x45   : > { %v234_v31 = vrot.slane %v233_v29, 1 }
  0x46   : > { %v243_v32 = vrot.slane %v242_v30, 1 }
  0x47   : > { %v235_v33 = vadd.f32 %v234_v31, %v233_v29 }
  0x48   : > { %v244_v34 = vadd.f32 %v243_v32, %v242_v30 }
  0x49   : > { %v246_v35 = vmul.f32 0.03125, %v235_v33 }
  0x4a   : > { %v247_v36 = vmul.f32 0.03125, %v244_v34 }
  0x4b   : > { %v248_v37 = vsub.f32 %v219_v9, %v246_v35  ;;  %v250_v38 = vsub.f32 %v221_v10, %v246_v35  ;;  %v252_v41 = vsub.f32 %v223_v14, %v246_v35  ;;  %v254_v47 = vsub.f32 %v225_v18, %v246_v35 }
  0x4c   : > { %v249_v39 = vsub.f32 %v220_v11, %v247_v36  ;;  %v251_v40 = vsub.f32 %v222_v12, %v247_v36  ;;  %v253_v44 = vsub.f32 %v224_v16, %v247_v36  ;;  %v255_v50 = vsub.f32 %v226_v20, %v247_v36 }
  0x4d   : > { %v256_v42 = vmul.f32 %v248_v37, %v248_v37  ;;  %v258_v43 = vmul.f32 %v250_v38, %v250_v38  ;;  %v260_v48 = vmul.f32 %v252_v41, %v252_v41  ;;  %v262_v53 = vmul.f32 %v254_v47, %v254_v47 }
  0x4e   : > { %v257_v45 = vmul.f32 %v249_v39, %v249_v39  ;;  %v259_v46 = vmul.f32 %v251_v40, %v251_v40  ;;  %v261_v51 = vmul.f32 %v253_v44, %v253_v44  ;;  %v263_v55 = vmul.f32 %v255_v50, %v255_v50 }
  0x4f   : > { %v264_v49 = vadd.f32 %v258_v43, %v256_v42 }
  0x50   : > { %v273_v52 = vadd.f32 %v259_v46, %v257_v45 }
  0x51   : > { %v265_v54 = vadd.f32 %v264_v49, %v260_v48 }
  0x52   : > { %v274_v56 = vadd.f32 %v273_v52, %v261_v51 }
  0x53   : > { %v266_v57 = vadd.f32 %v265_v54, %v262_v53 }
  0x54   : > { %v275_v58 = vadd.f32 %v274_v56, %v263_v55 }
  0x55   : > { %v267_v59 = vrot.slane %v266_v57, 4 }
  0x56   : > { %v276_v60 = vrot.slane %v275_v58, 4 }
  0x57   : > { %v268_v61 = vadd.f32 %v267_v59, %v266_v57 }
  0x58   : > { %v277_v62 = vadd.f32 %v276_v60, %v275_v58 }
  0x59   : > { %v269_v63 = vrot.slane %v268_v61, 2 }
  0x5a   : > { %v278_v0 = vrot.slane %v277_v62, 2 }
  0x5b   : > { %v270_v1 = vadd.f32 %v269_v63, %v268_v61 }
  0x5c   : > { %v279_v2 = vadd.f32 %v278_v0, %v277_v62 }
  0x5d   : > { %v271_v3 = vrot.slane %v270_v1, 1 }
  0x5e   : > { %v280_v4 = vrot.slane %v279_v2, 1 }
  0x5f   : > { %v272_v5 = vadd.f32 %v271_v3, %v270_v1 }
  0x60   : > { %v281_v6 = vadd.f32 %v280_v4, %v279_v2 }
  0x61   : > { %v282_v7 = vmul.f32 0.03125, %v272_v5 }
  0x62   : > { %v283_v8 = vmul.f32 0.03125, %v281_v6 }
  0x63   : > { %v284_v9 = vadd.f32 1e-05, %v282_v7 }
  0x64   : > { %v285_v10 = vadd.f32 1e-05, %v283_v8 }
  0x65   : > { %628 = vrsqrt.f32 %v284_v9 }
  0x66   : > { %630 = vrsqrt.f32 %v285_v10 }
  0x6f   : > { %v629_v11 = vpop.eup %628 }
  0x70   : > { %v631_v12 = vpop.eup %630  ;;  %v296_v13 = vmul.f32 %v629_v11, %v248_v37  ;;  %v298_v21 = vmul.f32 %v629_v11, %v250_v38  ;;  %v300_v25 = vmul.f32 %v629_v11, %v252_v41  ;;  %v302_v33 = vmul.f32 %v629_v11, %v254_v47 }
  0x71   : > { %v297_v14 = vmul.f32 %v631_v12, %v249_v39  ;;  %v299_v22 = vmul.f32 %v631_v12, %v251_v40  ;;  %v301_v26 = vmul.f32 %v631_v12, %v253_v44  ;;  %v303_v36 = vmul.f32 %v631_v12, %v255_v50 }
  0xb4   : > { %v335_v15 = vpop.permute.xlu1 %334  ;;  %v307_v16 = vpop.permute.xlu0 %306 }
  0xb5   : > { %v324_v17 = vmul.f32 %v307_v16, %v296_v13  ;;  %v325_v18 = vmul.f32 %v307_v16, %v297_v14 }
  0xb7   : > { %v352_v19 = vadd.f32 %v335_v15, %v324_v17  ;;  %v353_v20 = vadd.f32 %v335_v15, %v325_v18 }
  0xb8   : > { %v317_v23 = vpop.permute.xlu1 %316  ;;  %v312_v24 = vpop.permute.xlu0 %311 }
  0xb9   : > { %392 = vxpose.xlu1.b32.start [1/4] (short) %v353_v20, 128  ;;  %360 = vxpose.xlu0.b32.start [1/4] (short) %v352_v19, 128  ;;  %v326_v27 = vmul.f32 %v312_v24, %v298_v21  ;;  %v327_v28 = vmul.f32 %v312_v24, %v299_v22  ;;  %v328_v34 = vmul.f32 %v317_v23, %v300_v25 }
  0xba   : > { %v329_v35 = vmul.f32 %v317_v23, %v301_v26 }
  0xbc   : > { %v322_v29 = vpop.permute.xlu1 %321  ;;  %v340_v30 = vpop.permute.xlu0 %339 }
  0xbd   : > { %v354_v31 = vadd.f32 %v340_v30, %v326_v27  ;;  %v355_v32 = vadd.f32 %v340_v30, %v327_v28  ;;  %v330_v41 = vmul.f32 %v322_v29, %v302_v33  ;;  %v331_v42 = vmul.f32 %v322_v29, %v303_v36 }
  0xbf   : > { %393 = vxpose.xlu1.b32.cont [2/4] (short) %v355_v32, 128  ;;  %361 = vxpose.xlu0.b32.cont [2/4] (short) %v354_v31, 128 }
  0xc0   : > { %v345_v37 = vpop.permute.xlu0 %344  ;;  %v350_v40 = vpop.permute.xlu1 %349 }
  0xc1   : > { %v356_v38 = vadd.f32 %v345_v37, %v328_v34  ;;  %v357_v39 = vadd.f32 %v345_v37, %v329_v35  ;;  %v358_v43 = vadd.f32 %v350_v40, %v330_v41  ;;  %v359_v44 = vadd.f32 %v350_v40, %v331_v42 }
  0xc3   : > { %394 = vxpose.xlu1.b32.cont [3/4] (short) %v357_v39, 128  ;;  %362 = vxpose.xlu0.b32.cont [3/4] (short) %v356_v38, 128 }
  0xc7   : > { %395 = vxpose.xlu1.b32.end [4/4] (short) %v359_v44, 128  ;;  %363 = vxpose.xlu0.b32.end [4/4] (short) %v358_v43, 128 }
 0x13b   : > { %v408_v45 = vpop.trf.xlu1  ;;  %v376_v46 = vpop.trf.xlu0 }
 0x13c   : > { %441 = vst.msk [vmem:[%s878_s8 + $0x80] sm:$0xff] %vm424_vm0, %v408_v45  ;;  %425 = vst.msk [vmem:[%s878_s8] sm:$0xff] %vm424_vm0, %v376_v46 }
 0x13f   : > { %v409_v47 = vpop.trf.xlu1  ;;  %v377_v48 = vpop.trf.xlu0 }
 0x140   : > { %442 = vst.msk [vmem:[%s878_s8 + $0x88] sm:$0xff] %vm424_vm0, %v409_v47  ;;  %426 = vst.msk [vmem:[%s878_s8 + $0x8] sm:$0xff] %vm424_vm0, %v377_v48 }
 0x143   : > { %v410_v49 = vpop.trf.xlu1  ;;  %v378_v50 = vpop.trf.xlu0 }
 0x144   : > { %443 = vst.msk [vmem:[%s878_s8 + $0x90] sm:$0xff] %vm424_vm0, %v410_v49  ;;  %427 = vst.msk [vmem:[%s878_s8 + $0x10] sm:$0xff] %vm424_vm0, %v378_v50 }
 0x147   : > { %v411_v51 = vpop.trf.xlu1  ;;  %v379_v52 = vpop.trf.xlu0 }
 0x148   : > { %444 = vst.msk [vmem:[%s878_s8 + $0x98] sm:$0xff] %vm424_vm0, %v411_v51  ;;  %428 = vst.msk [vmem:[%s878_s8 + $0x18] sm:$0xff] %vm424_vm0, %v379_v52 }
 0x14b   : > { %v412_v53 = vpop.trf.xlu1  ;;  %v380_v54 = vpop.trf.xlu0 }
 0x14c   : > { %445 = vst.msk [vmem:[%s878_s8 + $0xa0] sm:$0xff] %vm424_vm0, %v412_v53  ;;  %429 = vst.msk [vmem:[%s878_s8 + $0x20] sm:$0xff] %vm424_vm0, %v380_v54 }
 0x14f   : > { %v413_v55 = vpop.trf.xlu1  ;;  %v381_v56 = vpop.trf.xlu0 }
 0x150   : > { %446 = vst.msk [vmem:[%s878_s8 + $0xa8] sm:$0xff] %vm424_vm0, %v413_v55  ;;  %430 = vst.msk [vmem:[%s878_s8 + $0x28] sm:$0xff] %vm424_vm0, %v381_v56 }
 0x153   : > { %v414_v57 = vpop.trf.xlu1  ;;  %v382_v58 = vpop.trf.xlu0 }
 0x154   : > { %447 = vst.msk [vmem:[%s878_s8 + $0xb0] sm:$0xff] %vm424_vm0, %v414_v57  ;;  %431 = vst.msk [vmem:[%s878_s8 + $0x30] sm:$0xff] %vm424_vm0, %v382_v58 }
 0x157   : > { %v415_v59 = vpop.trf.xlu1  ;;  %v383_v60 = vpop.trf.xlu0 }
 0x158   : > { %448 = vst.msk [vmem:[%s878_s8 + $0xb8] sm:$0xff] %vm424_vm0, %v415_v59  ;;  %432 = vst.msk [vmem:[%s878_s8 + $0x38] sm:$0xff] %vm424_vm0, %v383_v60 }
 0x15b   : > { %v416_v61 = vpop.trf.xlu1  ;;  %v384_v62 = vpop.trf.xlu0 }
 0x15c   : > { %449 = vst.msk [vmem:[%s878_s8 + $0xc0] sm:$0xff] %vm424_vm0, %v416_v61  ;;  %433 = vst.msk [vmem:[%s878_s8 + $0x40] sm:$0xff] %vm424_vm0, %v384_v62 }
 0x15f   : > { %v417_v63 = vpop.trf.xlu1  ;;  %v385_v0 = vpop.trf.xlu0 }
 0x160   : > { %450 = vst.msk [vmem:[%s878_s8 + $0xc8] sm:$0xff] %vm424_vm0, %v417_v63  ;;  %434 = vst.msk [vmem:[%s878_s8 + $0x48] sm:$0xff] %vm424_vm0, %v385_v0 }
 0x163   : > { %v418_v1 = vpop.trf.xlu1  ;;  %v386_v2 = vpop.trf.xlu0 }
 0x164   : > { %451 = vst.msk [vmem:[%s878_s8 + $0xd0] sm:$0xff] %vm424_vm0, %v418_v1  ;;  %435 = vst.msk [vmem:[%s878_s8 + $0x50] sm:$0xff] %vm424_vm0, %v386_v2 }
 0x167   : > { %v419_v3 = vpop.trf.xlu1  ;;  %v387_v4 = vpop.trf.xlu0 }
 0x168   : > { %452 = vst.msk [vmem:[%s878_s8 + $0xd8] sm:$0xff] %vm424_vm0, %v419_v3  ;;  %436 = vst.msk [vmem:[%s878_s8 + $0x58] sm:$0xff] %vm424_vm0, %v387_v4 }
 0x16b   : > { %v420_v5 = vpop.trf.xlu1  ;;  %v388_v6 = vpop.trf.xlu0 }
 0x16c   : > { %453 = vst.msk [vmem:[%s878_s8 + $0xe0] sm:$0xff] %vm424_vm0, %v420_v5  ;;  %437 = vst.msk [vmem:[%s878_s8 + $0x60] sm:$0xff] %vm424_vm0, %v388_v6 }
 0x16f   : > { %v421_v7 = vpop.trf.xlu1  ;;  %v389_v8 = vpop.trf.xlu0 }
 0x170   : > { %454 = vst.msk [vmem:[%s878_s8 + $0xe8] sm:$0xff] %vm424_vm0, %v421_v7  ;;  %438 = vst.msk [vmem:[%s878_s8 + $0x68] sm:$0xff] %vm424_vm0, %v389_v8 }
 0x173   : > { %v422_v9 = vpop.trf.xlu1  ;;  %v390_v10 = vpop.trf.xlu0 }
 0x174   : > { %455 = vst.msk [vmem:[%s878_s8 + $0xf0] sm:$0xff] %vm424_vm0, %v422_v9  ;;  %439 = vst.msk [vmem:[%s878_s8 + $0x70] sm:$0xff] %vm424_vm0, %v390_v10 }
 0x177   : > { %v423_v11 = vpop.trf.xlu1  ;;  %v391_v12 = vpop.trf.xlu0 }
 0x178   : > { %456 = vst.msk [vmem:[%s878_s8 + $0xf8] sm:$0xff] %vm424_vm0, %v423_v11  ;;  %440 = vst.msk [vmem:[%s878_s8 + $0x78] sm:$0xff] %vm424_vm0, %v391_v12 }
 0x179 PF: > { %s16_s17 = sadd.s32 1, %s712_s17   ;;  %s969_s12 = smov %s696_s13 }
 0x17a   : > { %p13_p9 = scmp.ge.s32.totalorder %s16_s17, 4   ;;  %s970_s13 = smov %s700_s14 }
 0x17b   : > { %s971_s14 = smov %s787_s24  ;;  %s972_s15 = smov %s708_s16 }
 0x17c   : > { %s973_s16 = smov %s975_s19  ;;  %15 = sbr.rel (!%p13_p9) target bundleno = 4 (0x4), region = 72 }
 0x183   :  { %487 = vsyncpa [#allocation3], 1 }
 0x184   :  { %489 = vsyncpa [#allocation3 + $0x1], 1 }

</bundles_post_ra>
